<compile_context>
chip_gen: v7x
topology: tpu7x:2x2x1
jax: 0.10.0
libtpu: 0.0.40
codegen_flags: <defaults>
</compile_context>

<pallas_src>
import functools

import jax
import jax.numpy as jnp
from jax.experimental import pallas as pl
from jax.experimental.pallas import tpu as pltpu


def policy_kernel(x_ref, w1_ref, b1_ref, drop_ref, w2_ref, b2_ref, o_ref,
                  *, approx_recip):
    # ---- Linear 1 on the MXU: bf16 operands, f32 accumulation ----
    h = jnp.dot(x_ref[...], w1_ref[...], preferred_element_type=jnp.float32)
    h = h + b1_ref[...]

    # ---- Fused Dropout(p=0.5, training) + ReLU (single select) ----
    # drop_ref holds 0.0 (dropped) or 1/(1-p)=2.0 (kept).
    h = jnp.where(h > 0.0, h * drop_ref[...], 0.0)

    # ---- Linear 2 on the MXU (activations back to bf16 for the MXU pass) ----
    logits = jnp.dot(h.astype(w2_ref.dtype), w2_ref[...],
                     preferred_element_type=jnp.float32)
    logits = logits + b2_ref[...]

    # ---- Softmax(dim=-1), numerically stable ----
    m = jnp.max(logits, axis=-1, keepdims=True)
    e = jnp.exp(logits - m)
    denom = jnp.sum(e, axis=-1, keepdims=True)
    if approx_recip:
        o_ref[...] = e * pl.reciprocal(denom, approx=True)   # EUP slot, ~free
    else:
        o_ref[...] = e / denom                                # portable fallback


def policy_forward(x, w1, b1, w2, b2, drop_mask=None, *, tile_b=128):
    """Forward pass of `Policy`.

    x:  (B, in_dim) f32      w1: (in_dim, hidden)   b1: (1, hidden)
    w2: (hidden, out_dim)    b2: (1, out_dim)
    drop_mask: (B, hidden) f32 with values {0.0, 1/(1-p)}; None => eval-mode
               identity (dropout disabled).
    """
    B, in_dim = x.shape
    hidden = w1.shape[1]
    out_dim = w2.shape[1]

    if drop_mask is None:               # model.eval() semantics: dropout = identity
        drop_mask = jnp.ones((B, hidden), jnp.float32)

    if B % tile_b != 0:                 # small / ragged batches: single tile
        tile_b = B
    n_tiles = B // tile_b

    # bf16 MXU operands: 2x MXU rate and half the activation/weight bytes on
    # v5e/v6e/v7x; biases, mask, accumulation and softmax stay in f32.
    x_bf = x.astype(jnp.bfloat16)
    w1_bf = w1.astype(jnp.bfloat16)
    w2_bf = w2.astype(jnp.bfloat16)

    resident = lambda a: pl.BlockSpec(a.shape, lambda i: (0, 0))
    kernel = functools.partial(
        policy_kernel, approx_recip=(jax.default_backend() == "tpu"))

    return pl.pallas_call(
        kernel,
        out_shape=jax.ShapeDtypeStruct((B, out_dim), jnp.float32),
        grid_spec=pltpu.PrefetchScalarGridSpec(
            num_scalar_prefetch=0,
            grid=(n_tiles,),
            in_specs=[
                pl.BlockSpec((tile_b, in_dim), lambda i: (i, 0)),   # x tile
                resident(w1_bf),
                resident(b1),
                pl.BlockSpec((tile_b, hidden), lambda i: (i, 0)),   # per-tile mask
                resident(w2_bf),
                resident(b2),
            ],
            out_specs=pl.BlockSpec((tile_b, out_dim), lambda i: (i, 0)),
        ),
        compiler_params=pltpu.CompilerParams(
            dimension_semantics=("parallel",)),   # megacore / 2-TC sharding on v7x
    )(x_bf, w1_bf, b1, drop_mask, w2_bf, b2)


if __name__ == "__main__":
    # CartPole-like sizes: 4 observations -> 32 hidden -> 2 actions.
    # Batch raised to 256 (vectorized envs / timesteps) per the perf review;
    # the grid processes 128 rows per step on a "parallel" axis.
    B, IN, HID, OUT = 256, 4, 32, 2
    TILE_B = 128

    key = jax.random.PRNGKey(0)
    k_x, k_w1, k_b1, k_w2, k_b2, k_drop = jax.random.split(key, 6)

    x = jax.random.normal(k_x, (B, IN), dtype=jnp.float32)

    # Deterministic parameter init (uniform, like torch Linear's default range).
    bound1 = 1.0 / (IN ** 0.5)
    w1 = jax.random.uniform(k_w1, (IN, HID), jnp.float32, -bound1, bound1)
    b1 = jax.random.uniform(k_b1, (1, HID), jnp.float32, -bound1, bound1)
    bound2 = 1.0 / (HID ** 0.5)
    w2 = jax.random.uniform(k_w2, (HID, OUT), jnp.float32, -bound2, bound2)
    b2 = jax.random.uniform(k_b2, (1, OUT), jnp.float32, -bound2, bound2)

    # Training-mode dropout mask: 0.0 with p=0.5, else 1/(1-p)=2.0 (per row,
    # per tile — each grid step reads its own mask rows, so no mask reuse).
    keep = jax.random.bernoulli(k_drop, p=0.5, shape=(B, HID))
    drop_mask = keep.astype(jnp.float32) * 2.0

    probs = policy_forward(x, w1, b1, w2, b2, drop_mask, tile_b=TILE_B)
    jax.block_until_ready(probs)

    # ---- sanity checks ----
    assert probs.shape == (B, OUT)
    row_sums = jnp.sum(probs, axis=-1)
    assert bool(jnp.allclose(row_sums, 1.0, atol=5e-3)), "softmax rows must sum to 1"

    # Pure-JAX reference with the identical dropout mask and bf16 rounding.
    xb = x.astype(jnp.bfloat16).astype(jnp.float32)
    w1b = w1.astype(jnp.bfloat16).astype(jnp.float32)
    w2b = w2.astype(jnp.bfloat16).astype(jnp.float32)
    h_ref = jnp.maximum(xb @ w1b + b1, 0.0) * drop_mask
    h_ref = h_ref.astype(jnp.bfloat16).astype(jnp.float32)
    ref = jax.nn.softmax(h_ref @ w2b + b2, axis=-1)
    assert bool(jnp.allclose(probs, ref, atol=2e-2)), "mismatch vs pure-JAX reference"

    print("KERNEL_OK")
</pallas_src>

<mosaic_0001>
module attributes {stable_mosaic.version = 11 : i64} {
  func.func @policy_kernel(%arg0: i32, %arg1: memref<128x4xbf16, #tpu.memory_space<vmem>>, %arg2: memref<4x32xbf16, #tpu.memory_space<vmem>>, %arg3: memref<1x32xf32, #tpu.memory_space<vmem>>, %arg4: memref<128x32xf32, #tpu.memory_space<vmem>>, %arg5: memref<32x2xbf16, #tpu.memory_space<vmem>>, %arg6: memref<1x2xf32, #tpu.memory_space<vmem>>, %arg7: memref<128x2xf32, #tpu.memory_space<vmem>>) attributes {dimension_semantics = [#tpu.dimension_semantics<parallel>], iteration_bounds = array<i64: 2>, scalar_prefetch = 0 : i64, scratch_operands = 0 : i64, tpu.core_type = #tpu.core_type<tc>, window_params = [{transform_indices = @transform_0, window_bounds = array<i64: 128, 4>}, {pipeline_mode = #tpu.pipeline_mode<synchronous>, transform_indices = @transform_1, window_bounds = array<i64: 4, 32>}, {pipeline_mode = #tpu.pipeline_mode<synchronous>, transform_indices = @transform_2, window_bounds = array<i64: 1, 32>}, {transform_indices = @transform_3, window_bounds = array<i64: 128, 32>}, {pipeline_mode = #tpu.pipeline_mode<synchronous>, transform_indices = @transform_4, window_bounds = array<i64: 32, 2>}, {pipeline_mode = #tpu.pipeline_mode<synchronous>, transform_indices = @transform_5, window_bounds = array<i64: 1, 2>}, {transform_indices = @transform_6, window_bounds = array<i64: 128, 2>}]} {
    %c0 = arith.constant 0 : index
    %c0_0 = arith.constant 0 : index
    %0 = vector.load %arg1[%c0, %c0_0] : memref<128x4xbf16, #tpu.memory_space<vmem>>, vector<128x4xbf16>
    %c0_1 = arith.constant 0 : index
    %c0_2 = arith.constant 0 : index
    %1 = vector.load %arg2[%c0_1, %c0_2] : memref<4x32xbf16, #tpu.memory_space<vmem>>, vector<4x32xbf16>
    %cst = arith.constant dense<0.000000e+00> : vector<128x32xf32>
    %2 = tpu.matmul %0, %1, %cst {dimension_numbers = #tpu.dot_dimension_numbers<[1], [0], [0], [1], [0, 0, 1, 1], [], []>} : vector<128x4xbf16>, vector<4x32xbf16>, vector<128x32xf32> -> vector<128x32xf32>
    %c0_3 = arith.constant 0 : index
    %c0_4 = arith.constant 0 : index
    %3 = vector.load %arg3[%c0_3, %c0_4] : memref<1x32xf32, #tpu.memory_space<vmem>>, vector<1x32xf32>
    %4 = vector.broadcast %3 : vector<1x32xf32> to vector<128x32xf32>
    %5 = arith.addf %2, %4 : vector<128x32xf32>
    %cst_5 = arith.constant 0.000000e+00 : f32
    %6 = vector.broadcast %cst_5 : f32 to vector<128x32xf32>
    %7 = arith.cmpf ogt, %5, %6 : vector<128x32xf32>
    %c0_6 = arith.constant 0 : index
    %c0_7 = arith.constant 0 : index
    %8 = vector.load %arg4[%c0_6, %c0_7] : memref<128x32xf32, #tpu.memory_space<vmem>>, vector<128x32xf32>
    %9 = arith.mulf %5, %8 : vector<128x32xf32>
    %cst_8 = arith.constant 0.000000e+00 : f32
    %10 = vector.broadcast %cst_8 : f32 to vector<128x32xf32>
    %11 = arith.select %7, %9, %10 : vector<128x32xi1>, vector<128x32xf32>
    %12 = arith.truncf %11 : vector<128x32xf32> to vector<128x32xbf16>
    %c0_9 = arith.constant 0 : index
    %c0_10 = arith.constant 0 : index
    %13 = vector.load %arg5[%c0_9, %c0_10] : memref<32x2xbf16, #tpu.memory_space<vmem>>, vector<32x2xbf16>
    %cst_11 = arith.constant dense<0.000000e+00> : vector<128x2xf32>
    %14 = tpu.matmul %12, %13, %cst_11 {dimension_numbers = #tpu.dot_dimension_numbers<[1], [0], [0], [1], [0, 0, 1, 1], [], []>} : vector<128x32xbf16>, vector<32x2xbf16>, vector<128x2xf32> -> vector<128x2xf32>
    %c0_12 = arith.constant 0 : index
    %c0_13 = arith.constant 0 : index
    %15 = vector.load %arg6[%c0_12, %c0_13] : memref<1x2xf32, #tpu.memory_space<vmem>>, vector<1x2xf32>
    %16 = vector.broadcast %15 : vector<1x2xf32> to vector<128x2xf32>
    %17 = arith.addf %14, %16 : vector<128x2xf32>
    %cst_14 = arith.constant dense<0xFF800000> : vector<128xf32>
    %18 = vector.multi_reduction <maximumf>, %17, %cst_14 [1] : vector<128x2xf32> to vector<128xf32>
    %19 = vector.shape_cast %18 : vector<128xf32> to vector<128x1xf32>
    %20 = vector.broadcast %19 : vector<128x1xf32> to vector<128x2xf32>
    %21 = arith.subf %17, %20 : vector<128x2xf32>
    %22 = math.exp %21 : vector<128x2xf32>
    %cst_15 = arith.constant dense<0.000000e+00> : vector<128xf32>
    %23 = vector.multi_reduction <add>, %22, %cst_15 [1] : vector<128x2xf32> to vector<128xf32>
    %24 = vector.shape_cast %23 : vector<128xf32> to vector<128x1xf32>
    %25 = vector.broadcast %24 : vector<128x1xf32> to vector<128x2xf32>
    %26 = arith.divf %22, %25 : vector<128x2xf32>
    %c0_16 = arith.constant 0 : index
    %c0_17 = arith.constant 0 : index
    %27 = vector.load %arg7[%c0_16, %c0_17] : memref<128x2xf32, #tpu.memory_space<vmem>>, vector<128x2xf32>
    tpu.vector_store %arg7[%c0_16, %c0_17], %26 {strides = array<i32>} : memref<128x2xf32, #tpu.memory_space<vmem>>, vector<128x2xf32>,
    return
  }
  func.func @transform_0(%arg0: i32) -> (i32, i32) {
    %c0_i32 = arith.constant 0 : i32
    %c0_i32_0 = arith.constant 0 : i32
    return %arg0, %c0_i32 : i32, i32
  }
  func.func @transform_1(%arg0: i32) -> (i32, i32) {
    %c0_i32 = arith.constant 0 : i32
    %c0_i32_0 = arith.constant 0 : i32
    %c0_i32_1 = arith.constant 0 : i32
    return %c0_i32, %c0_i32_0 : i32, i32
  }
  func.func @transform_2(%arg0: i32) -> (i32, i32) {
    %c0_i32 = arith.constant 0 : i32
    %c0_i32_0 = arith.constant 0 : i32
    %c0_i32_1 = arith.constant 0 : i32
    return %c0_i32, %c0_i32_0 : i32, i32
  }
  func.func @transform_3(%arg0: i32) -> (i32, i32) {
    %c0_i32 = arith.constant 0 : i32
    %c0_i32_0 = arith.constant 0 : i32
    return %arg0, %c0_i32 : i32, i32
  }
  func.func @transform_4(%arg0: i32) -> (i32, i32) {
    %c0_i32 = arith.constant 0 : i32
    %c0_i32_0 = arith.constant 0 : i32
    %c0_i32_1 = arith.constant 0 : i32
    return %c0_i32, %c0_i32_0 : i32, i32
  }
  func.func @transform_5(%arg0: i32) -> (i32, i32) {
    %c0_i32 = arith.constant 0 : i32
    %c0_i32_0 = arith.constant 0 : i32
    %c0_i32_1 = arith.constant 0 : i32
    return %c0_i32, %c0_i32_0 : i32, i32
  }
  func.func @transform_6(%arg0: i32) -> (i32, i32) {
    %c0_i32 = arith.constant 0 : i32
    %c0_i32_0 = arith.constant 0 : i32
    return %arg0, %c0_i32 : i32, i32
  }
}

</mosaic_0001>

<bundles_post_ra>
// kernel: tpu_custom_call.1
= control target key start
LH: loop header
LB: loop body
LE: loop exit
PB: predicated region body
PF: predicated region fallthrough
CT: control target
= control target key end

     0   :  { %s1170_s21 = smov 0   ;;  %s1459_s0 = inlined_call_operand.vmem [shape: bf16[256,4], index: 0, kind: input, shape index: {}]   ;;  %s1460_s1 = inlined_call_operand.vmem [shape: bf16[4,32], index: 1, kind: input, shape index: {}]   ;;  %s1461_s2 = inlined_call_operand.vmem [shape: f32[1,32], index: 2, kind: input, shape index: {}]   ;;  %s1462_s3 = inlined_call_operand.vmem [shape: f32[256,32], index: 3, kind: input, shape index: {}]   ;;  %s1463_s4 = inlined_call_operand.vmem [shape: bf16[32,2], index: 4, kind: input, shape index: {}]   ;;  %s1464_s5 = inlined_call_operand.vmem [shape: f32[1,2], index: 5, kind: input, shape index: {}]   ;;  %s1465_s6 = inlined_call_operand.vmem [shape: f32[256,2], index: 6, kind: output, shape index: {}]  }
   0x1 LB: > { %s946_s22 = sadd.s32 4294967295, %s1133_s21   ;;  %p950_p0 = scmp.ge.s32.totalorder %s1133_s21, 1  ;;  %s1133_s21 = sphi %s1170_s21, %s16_s21  }
   0x2   : > { %p224_p1 = scmp.lt.s32.totalorder %s1133_s21, 3 }
   0x4   : > { %p225_p2 = pnand %p950_p0, %p224_p1 }
   0x5   : > { %v294_v0 = vld [vmem:[%s1460_s1] sm:$0x3] (!%p225_p2)  ;;  %vm367_vm0 = vcmask (!%p225_p2), 1041408   ;;  %s951_s25 = sshll.u32 (!%p225_p2), %s946_s22, 4  ;;  %vm342_vm1 = vcmask (!%p225_p2), 31744   ;;  %v1062_v11 = vld [vmem:[%s1463_s4 + $0x8] sm:$0xff] (!%p225_p2)  }
   0x6   : > { %228 = sbr.rel (%p225_p2) target bundleno = 802 (0x322), region = 44  ;;  %1044 = vmatprep.subr.msk.bf16.mxu0 (!%p225_p2), %vm367_vm0, %v294_v0  ;;  %v369_v1 = vsel (!%p225_p2), %vm367_vm0, %v294_v0, 0  ;;  %p260_p3 = scmp.lt.s32.totalorder (!%p225_p2), %s951_s25, 31  ;;  %v1061_v10 = vld [vmem:[%s1463_s4] sm:$0xff] (!%p225_p2)   ;;  %vm563_vm6 = vcmask (!%p225_p2), 261120  }
   0x7   : > { %1007 = vmatpush3.bf16.msra.mxu0 (!%p225_p2), %v369_v1  ;;  %1024 = vmatprep.subr.bf16.mxu1 (!%p225_p2), %v1061_v10  ;;  %v1212_v12 = vld [vmem:[%s1461_s2] ss:$0 sm:$0xff] (!%p225_p2) }
   0x8   : > { %1025 = vmatpush3.bf16.msra.mxu1 (!%p225_p2), %v1061_v10 }
   0x9   : > { %1026 = vmatprep.subr.bf16.mxu1 (!%p225_p2), %v1062_v11 }
   0xc   : > { %1027 = vmatpush3.bf16.msra.mxu1 (!%p225_p2), %v1062_v11 }
   0xd   : > { %s1467_s25 = smov (!%p260_p3, %s951_s25), 31 }
   0xe   : > { %s952_s26 = sshll.u32 %s1467_s25, 2  ;;  %s954_s10 = sshll.u32 %s1467_s25, 3 }
   0xf   : > { %s263_s29 = scalar_lea.vmem %s1459_s0, %s952_s26  ;;  %s1207_s13 = scalar_lea.vmem %s1462_s3, %s954_s10 }
  0x10   : > { %v1053_v2 = vld [vmem:[%s263_s29] sm:$0xff]   ;;  %v1054_v3 = vld [vmem:[%s263_s29 + $0x8] sm:$0xff]   ;;  %v1055_v4 = vld [vmem:[%s263_s29 + $0x10] sm:$0xff]   ;;  %s1406_s20 = scalar_lea.vmem %s1465_s6, %s954_s10 }
  0x11   : > { %1008 = vmatprep.mubr.msk.bf16.mxu0 %vm342_vm1, %v1053_v2  ;;  %v1056_v5 = vld [vmem:[%s263_s29 + $0x18] sm:$0xff]   ;;  %v1057_v6 = vld [vmem:[%s263_s29 + $0x20] sm:$0xff]   ;;  %v1058_v7 = vld [vmem:[%s263_s29 + $0x28] sm:$0xff]  }
  0x12   : > { %1009 = vmatmul.mubr.msk.bf16.vlgmr.msra.gmra.mrb[0].mxu0 %vm342_vm1, %v1054_v3  ;;  %v1059_v8 = vld [vmem:[%s263_s29 + $0x30] sm:$0xff]   ;;  %v1060_v9 = vld [vmem:[%s263_s29 + $0x38] sm:$0xff]   ;;  %v484_v17 = vld [vmem:[%s1207_s13] sm:$0xff] }
  0x13   : > { %1012 = vmatprep.mubr.msk.bf16.mxu0 %vm342_vm1, %v1055_v4  ;;  %v486_v14 = vld [vmem:[%s1207_s13 + $0x10] sm:$0xff]  ;;  %v487_v20 = vld [vmem:[%s1207_s13 + $0x18] sm:$0xff]  ;;  %v485_v24 = vld [vmem:[%s1207_s13 + $0x8] sm:$0xff] }
  0x14   : > { %v490_v34 = vld [vmem:[%s1207_s13 + $0x30] sm:$0xff]  ;;  %v488_v38 = vld [vmem:[%s1207_s13 + $0x20] sm:$0xff]  ;;  %v491_v42 = vld [vmem:[%s1207_s13 + $0x38] sm:$0xff] }
  0x15   : > { %v489_v46 = vld [vmem:[%s1207_s13 + $0x28] sm:$0xff]  ;;  %v494_v57 = vld [vmem:[%s1207_s13 + $0x50] sm:$0xff]  ;;  %v492_v61 = vld [vmem:[%s1207_s13 + $0x40] sm:$0xff] }
  0x16   : > { %v495_v0 = vld [vmem:[%s1207_s13 + $0x58] sm:$0xff]  ;;  %v493_v4 = vld [vmem:[%s1207_s13 + $0x48] sm:$0xff] }
  0x1a   : > { %1013 = vmatmul.mubr.msk.bf16.gmra.mrb[4].mxu0 %vm342_vm1, %v1056_v5 }
  0x1b   : > { %1016 = vmatprep.mubr.msk.bf16.mxu0 %vm342_vm1, %v1057_v6 }
  0x22   : > { %1017 = vmatmul.mubr.msk.bf16.gmra.mrb[8].mxu0 %vm342_vm1, %v1058_v7 }
  0x23   : > { %1020 = vmatprep.mubr.msk.bf16.mxu0 %vm342_vm1, %v1059_v8 }
  0x2a   : > { %1021 = vmatmul.mubr.msk.bf16.gmra.mrb[12].mxu0 %vm342_vm1, %v1060_v9 }
  0xe5   : > { %v1010_v13 = vpop.f32.mrb[0].mxu0 }
  0xe6   : > { %v414_v15 = vadd.f32 %v1010_v13, %v1212_v12  ;;  %v405_v16 = vpop.f32.mrb[1].mxu0 }
  0xe7   : > { %v406_v18 = vadd.f32 %v1212_v12, %v405_v16  ;;  %v1011_v19 = vpop.f32.mrb[2].mxu0  ;;  %v498_v16 = vld [vmem:[%s1207_s13 + $0x70] sm:$0xff] }
  0xe8   : > { %vm470_vm2 = vcmp.gt.f32.partialorder %v414_v15, 0.0  ;;  %v502_v21 = vmul.f32 %v486_v14, %v414_v15  ;;  %v417_v22 = vadd.f32 %v1011_v19, %v1212_v12  ;;  %v408_v23 = vpop.f32.mrb[3].mxu0 }
  0xe9   : > { %vm468_vm3 = vcmp.gt.f32.partialorder %v406_v18, 0.0  ;;  %v500_v25 = vmul.f32 %v484_v17, %v406_v18  ;;  %v409_v26 = vadd.f32 %v1212_v12, %v408_v23  ;;  %v499_v23 = vld [vmem:[%s1207_s13 + $0x78] sm:$0xff] }
  0xea   : > { %v518_v27 = vsel %vm470_vm2, %v502_v21, 0.0  ;;  %vm471_vm4 = vcmp.gt.f32.partialorder %v417_v22, 0.0  ;;  %v503_v28 = vmul.f32 %v487_v20, %v417_v22  ;;  %v496_v20 = vld [vmem:[%s1207_s13 + $0x60] sm:$0xff] }
  0xeb   : > { %vm469_vm5 = vcmp.gt.f32.partialorder %v409_v26, 0.0  ;;  %v501_v29 = vmul.f32 %v485_v24, %v409_v26  ;;  %v516_v30 = vsel %vm468_vm3, %v500_v25, 0.0  ;;  %vm685_vm3 = vcmask 15360  }
  0xec   : > { %v519_v31 = vsel %vm471_vm4, %v503_v28, 0.0 }
  0xed   : > { %v533_v32 = vpack.c.bf16 %v519_v31, %v518_v27  ;;  %v1014_v33 = vpop.f32.mrb[4].mxu0  ;;  %v517_v35 = vsel %vm469_vm5, %v501_v29, 0.0  ;;  %v497_v27 = vld [vmem:[%s1207_s13 + $0x68] sm:$0xff] }
  0xee   : > { %v430_v36 = vadd.f32 %v1014_v33, %v1212_v12  ;;  %v421_v37 = vpop.f32.mrb[5].mxu0  ;;  %v532_v39 = vpack.c.bf16 %v517_v35, %v516_v30 }
  0xef   : > { %v422_v40 = vadd.f32 %v1212_v12, %v421_v37  ;;  %v1015_v41 = vpop.f32.mrb[6].mxu0 }
  0xf0   : > { %vm474_vm7 = vcmp.gt.f32.partialorder %v430_v36, 0.0  ;;  %v506_v43 = vmul.f32 %v490_v34, %v430_v36  ;;  %v433_v44 = vadd.f32 %v1015_v41, %v1212_v12  ;;  %v424_v45 = vpop.f32.mrb[7].mxu0  ;;  %1028 = vmatprep.mubr.msk.bf16.mxu1 %vm563_vm6, %v532_v39 }
  0xf1   : > { %vm472_vm8 = vcmp.gt.f32.partialorder %v422_v40, 0.0  ;;  %v504_v47 = vmul.f32 %v488_v38, %v422_v40  ;;  %v425_v48 = vadd.f32 %v1212_v12, %v424_v45  ;;  %1029 = vmatmul.mubr.msk.bf16.vlgmr.msra.gmra.mrb[0].mxu1 %vm563_vm6, %v533_v32 }
  0xf2   : > { %v522_v49 = vsel %vm474_vm7, %v506_v43, 0.0  ;;  %vm475_vm9 = vcmp.gt.f32.partialorder %v433_v44, 0.0  ;;  %v507_v50 = vmul.f32 %v491_v42, %v433_v44 }
  0xf3   : > { %v520_v51 = vsel %vm472_vm8, %v504_v47, 0.0  ;;  %vm473_vm10 = vcmp.gt.f32.partialorder %v425_v48, 0.0  ;;  %v505_v52 = vmul.f32 %v489_v46, %v425_v48 }
  0xf4   : > { %v523_v53 = vsel %vm475_vm9, %v507_v50, 0.0 }
  0xf5   : > { %v535_v54 = vpack.c.bf16 %v523_v53, %v522_v49  ;;  %v521_v55 = vsel %vm473_vm10, %v505_v52, 0.0  ;;  %v1018_v56 = vpop.f32.mrb[8].mxu0 }
  0xf6   : > { %v534_v58 = vpack.c.bf16 %v521_v55, %v520_v51  ;;  %v446_v59 = vadd.f32 %v1018_v56, %v1212_v12  ;;  %v437_v60 = vpop.f32.mrb[9].mxu0 }
  0xf7   : > { %v438_v62 = vadd.f32 %v1212_v12, %v437_v60  ;;  %v1019_v63 = vpop.f32.mrb[10].mxu0 }
  0xf8   : > { %vm478_vm11 = vcmp.gt.f32.partialorder %v446_v59, 0.0  ;;  %v510_v1 = vmul.f32 %v494_v57, %v446_v59  ;;  %v449_v2 = vadd.f32 %v1019_v63, %v1212_v12  ;;  %v440_v3 = vpop.f32.mrb[11].mxu0  ;;  %1032 = vmatprep.mubr.msk.bf16.mxu1 %vm563_vm6, %v534_v58 }
  0xf9   : > { %vm476_vm12 = vcmp.gt.f32.partialorder %v438_v62, 0.0  ;;  %v508_v5 = vmul.f32 %v492_v61, %v438_v62  ;;  %v441_v6 = vadd.f32 %v1212_v12, %v440_v3  ;;  %1033 = vmatmul.mubr.msk.bf16.gmra.mrb[4].mxu1 %vm563_vm6, %v535_v54 }
  0xfa   : > { %v526_v7 = vsel %vm478_vm11, %v510_v1, 0.0  ;;  %vm479_vm13 = vcmp.gt.f32.partialorder %v449_v2, 0.0  ;;  %v511_v8 = vmul.f32 %v495_v0, %v449_v2 }
  0xfb   : > { %v524_v9 = vsel %vm476_vm12, %v508_v5, 0.0  ;;  %vm477_vm14 = vcmp.gt.f32.partialorder %v441_v6, 0.0  ;;  %v509_v10 = vmul.f32 %v493_v4, %v441_v6 }
  0xfc   : > { %v527_v11 = vsel %vm479_vm13, %v511_v8, 0.0 }
  0xfd   : > { %v537_v13 = vpack.c.bf16 %v527_v11, %v526_v7  ;;  %v525_v14 = vsel %vm477_vm14, %v509_v10, 0.0  ;;  %v1022_v15 = vpop.f32.mrb[12].mxu0 }
  0xfe   : > { %v536_v17 = vpack.c.bf16 %v525_v14, %v524_v9  ;;  %v462_v18 = vadd.f32 %v1022_v15, %v1212_v12  ;;  %v453_v19 = vpop.f32.mrb[13].mxu0 }
  0xff   : > { %v454_v21 = vadd.f32 %v1212_v12, %v453_v19  ;;  %v1023_v22 = vpop.f32.mrb[14].mxu0 }
 0x100   : > { %vm482_vm15 = vcmp.gt.f32.partialorder %v462_v18, 0.0  ;;  %v514_v24 = vmul.f32 %v498_v16, %v462_v18  ;;  %v465_v25 = vadd.f32 %v1023_v22, %v1212_v12  ;;  %v456_v26 = vpop.f32.mrb[15].mxu0  ;;  %1036 = vmatprep.mubr.msk.bf16.mxu1 %vm563_vm6, %v536_v17 }
 0x101   : > { %vm480_vm0 = vcmp.gt.f32.partialorder %v454_v21, 0.0  ;;  %v512_v28 = vmul.f32 %v496_v20, %v454_v21  ;;  %v457_v29 = vadd.f32 %v1212_v12, %v456_v26  ;;  %1037 = vmatmul.mubr.msk.bf16.gmra.mrb[8].mxu1 %vm563_vm6, %v537_v13  ;;  %v974_v12 = vld [vmem:[%s1464_s5] ss:$0 sm:$0xff] }
 0x102   : > { %v530_v30 = vsel %vm482_vm15, %v514_v24, 0.0  ;;  %vm483_vm1 = vcmp.gt.f32.partialorder %v465_v25, 0.0  ;;  %v515_v31 = vmul.f32 %v499_v23, %v465_v25 }
 0x103   : > { %v528_v32 = vsel %vm480_vm0, %v512_v28, 0.0  ;;  %vm481_vm2 = vcmp.gt.f32.partialorder %v457_v29, 0.0  ;;  %v513_v33 = vmul.f32 %v497_v27, %v457_v29 }
 0x104   : > { %v531_v34 = vsel %vm483_vm1, %v515_v31, 0.0 }
 0x105   : > { %v539_v35 = vpack.c.bf16 %v531_v34, %v530_v30  ;;  %v529_v36 = vsel %vm481_vm2, %v513_v33, 0.0 }
 0x106   : > { %v538_v37 = vpack.c.bf16 %v529_v36, %v528_v32 }
 0x108   : > { %1040 = vmatprep.mubr.msk.bf16.mxu1 %vm563_vm6, %v538_v37 }
 0x109   : > { %1041 = vmatmul.mubr.msk.bf16.gmra.mrb[12].mxu1 %vm563_vm6, %v539_v35 }
 0x1c4   : > { %v1030_v38 = vpop.f32.mrb[0].mxu1 }
 0x1c5   : > { %v1257_v39 = vadd.f32 %v1030_v38, %v974_v12  ;;  %v622_v40 = vpop.f32.mrb[1].mxu1 }
 0x1c6   : > { %v1259_v41 = vadd.f32 %v974_v12, %v622_v40  ;;  %v1031_v42 = vpop.f32.mrb[2].mxu1 }
 0x1c7   : > { %v1261_v43 = vadd.f32 %v1031_v42, %v974_v12  ;;  %v625_v44 = vpop.f32.mrb[3].mxu1  ;;  %v692_v45 = vsel %vm685_vm3, %v1257_v39, -inf }
 0x1c8   : > { %v1265_v46 = vadd.f32 %v974_v12, %v625_v44  ;;  %693 = vmax.xlane.f32.xlu1 %v692_v45  ;;  %v686_v47 = vsel %vm685_vm3, %v1259_v41, -inf }
 0x1c9   : > { %687 = vmax.xlane.f32.xlu0 %v686_v47  ;;  %v695_v48 = vsel %vm685_vm3, %v1261_v43, -inf }
 0x1ca   : > { %v689_v50 = vsel %vm685_vm3, %v1265_v46, -inf }
 0x1cc   : > { %696 = vmax.xlane.f32.xlu1 %v695_v48  ;;  %v1034_v49 = vpop.f32.mrb[4].mxu1 }
 0x1cd   : > { %v1273_v51 = vadd.f32 %v1034_v49, %v974_v12  ;;  %v638_v52 = vpop.f32.mrb[5].mxu1  ;;  %690 = vmax.xlane.f32.xlu0 %v689_v50 }
 0x1ce   : > { %v1035_v53 = vpop.f32.mrb[6].mxu1  ;;  %v1279_v57 = vadd.f32 %v974_v12, %v638_v52 }
 0x1cf   : > { %v1275_v54 = vadd.f32 %v1035_v53, %v974_v12  ;;  %v641_v55 = vpop.f32.mrb[7].mxu1  ;;  %v704_v56 = vsel %vm685_vm3, %v1273_v51, -inf }
 0x1d0   : > { %v1281_v58 = vadd.f32 %v974_v12, %v641_v55  ;;  %v698_v61 = vsel %vm685_vm3, %v1279_v57, -inf }
 0x1d1   : > { %705 = vmax.xlane.f32.xlu0 %v704_v56  ;;  %v707_v59 = vsel %vm685_vm3, %v1275_v54, -inf }
 0x1d2   : > { %708 = vmax.xlane.f32.xlu1 %v707_v59  ;;  %v701_v0 = vsel %vm685_vm3, %v1281_v58, -inf }
 0x1d4   : > { %v1038_v60 = vpop.f32.mrb[8].mxu1 }
 0x1d5   : > { %v1287_v62 = vadd.f32 %v1038_v60, %v974_v12  ;;  %v654_v63 = vpop.f32.mrb[9].mxu1  ;;  %699 = vmax.xlane.f32.xlu0 %v698_v61 }
 0x1d6   : > { %v1039_v1 = vpop.f32.mrb[10].mxu1  ;;  %702 = vmax.xlane.f32.xlu1 %v701_v0  ;;  %v1295_v5 = vadd.f32 %v974_v12, %v654_v63 }
 0x1d7   : > { %v1291_v2 = vadd.f32 %v1039_v1, %v974_v12  ;;  %v657_v3 = vpop.f32.mrb[11].mxu1  ;;  %v716_v4 = vsel %vm685_vm3, %v1287_v62, -inf }
 0x1d8   : > { %v1297_v6 = vadd.f32 %v974_v12, %v657_v3  ;;  %v710_v9 = vsel %vm685_vm3, %v1295_v5, -inf }
 0x1d9   : > { %717 = vmax.xlane.f32.xlu0 %v716_v4  ;;  %v719_v7 = vsel %vm685_vm3, %v1291_v2, -inf }
 0x1da   : > { %720 = vmax.xlane.f32.xlu1 %v719_v7  ;;  %v713_v11 = vsel %vm685_vm3, %v1297_v6, -inf }
 0x1dc   : > { %v1042_v8 = vpop.f32.mrb[12].mxu1 }
 0x1dd   : > { %v670_v10 = vpop.f32.mrb[13].mxu1  ;;  %711 = vmax.xlane.f32.xlu0 %v710_v9  ;;  %v1307_v16 = vadd.f32 %v1042_v8, %v974_v12 }
 0x1de   : > { %v1305_v13 = vadd.f32 %v974_v12, %v670_v10  ;;  %v1043_v14 = vpop.f32.mrb[14].mxu1  ;;  %714 = vmax.xlane.f32.xlu1 %v713_v11 }
 0x1df   : > { %v673_v15 = vpop.f32.mrb[15].mxu1  ;;  %v1313_v19 = vadd.f32 %v1043_v14, %v974_v12  ;;  %v728_v21 = vsel %vm685_vm3, %v1307_v16, -inf }
 0x1e0   : > { %v1309_v17 = vadd.f32 %v974_v12, %v673_v15  ;;  %v722_v18 = vsel %vm685_vm3, %v1305_v13, -inf }
 0x1e1   : > { %723 = vmax.xlane.f32.xlu0 %v722_v18  ;;  %v731_v22 = vsel %vm685_vm3, %v1313_v19, -inf }
 0x1e2   : > { %v725_v20 = vsel %vm685_vm3, %v1309_v17, -inf }
 0x1e3   : > { %726 = vmax.xlane.f32.xlu1 %v725_v20 }
 0x1e5   : > { %729 = vmax.xlane.f32.xlu0 %v728_v21 }
 0x1e7   : > { %732 = vmax.xlane.f32.xlu1 %v731_v22 }
 0x255   : > { %v694_v23 = vpop.xlane.xlu1 %693 }
 0x256   : > { %v736_v24 = vsub.f32 %v1257_v39, %v694_v23  ;;  %v688_v25 = vpop.xlane.xlu0 %687 }
 0x257   : > { %v734_v26 = vsub.f32 %v1259_v41, %v688_v25 }
 0x258   : > { %v754_v27 = vmul.f32 1.442695, %v736_v24 }
 0x259   : > { %v750_v28 = vmul.f32 1.442695, %v734_v26  ;;  %v697_v29 = vpop.xlane.xlu1 %696 }
 0x25a   : > { %1063 = vpow2.f32 %v754_v27  ;;  %v737_v30 = vsub.f32 %v1261_v43, %v697_v29  ;;  %v691_v31 = vpop.xlane.xlu0 %690 }
 0x25b   : > { %v735_v32 = vsub.f32 %v1265_v46, %v691_v31  ;;  %1065 = vpow2.f32 %v750_v28 }
 0x25c   : > { %v756_v33 = vmul.f32 1.442695, %v737_v30 }
 0x25d   : > { %v752_v34 = vmul.f32 1.442695, %v735_v32 }
 0x25e   : > { %1067 = vpow2.f32 %v756_v33  ;;  %v706_v35 = vpop.xlane.xlu0 %705 }
 0x25f   : > { %v740_v36 = vsub.f32 %v1273_v51, %v706_v35  ;;  %v709_v37 = vpop.xlane.xlu1 %708  ;;  %1069 = vpow2.f32 %v752_v34 }
 0x260   : > { %v741_v12 = vsub.f32 %v1275_v54, %v709_v37 }
 0x261   : > { %v762_v38 = vmul.f32 1.442695, %v740_v36 }
 0x262   : > { %v764_v39 = vmul.f32 1.442695, %v741_v12  ;;  %v700_v40 = vpop.xlane.xlu0 %699 }
 0x263   : > { %1071 = vpow2.f32 %v762_v38  ;;  %v738_v41 = vsub.f32 %v1279_v57, %v700_v40  ;;  %v703_v42 = vpop.xlane.xlu1 %702 }
 0x264   : > { %v1328_v43 = vpop.eup %1063  ;;  %1073 = vpow2.f32 %v764_v39  ;;  %v739_v44 = vsub.f32 %v1281_v58, %v703_v42 }
 0x265   : > { %v758_v45 = vmul.f32 1.442695, %v738_v41  ;;  %v788_v46 = vsel %vm685_vm3, %v1328_v43, 0.0  ;;  %v1333_v47 = vpop.eup %1065 }
 0x266   : > { %v760_v48 = vmul.f32 1.442695, %v739_v44  ;;  %789 = vadd.xlane.f32.xlu0 %v788_v46  ;;  %v718_v49 = vpop.xlane.xlu0 %717  ;;  %v782_v56 = vsel %vm685_vm3, %v1333_v47, 0.0 }
 0x267   : > { %1075 = vpow2.f32 %v758_v45  ;;  %v744_v50 = vsub.f32 %v1287_v62, %v718_v49  ;;  %v721_v51 = vpop.xlane.xlu1 %720 }
 0x268   : > { %v1336_v52 = vpop.eup %1067  ;;  %1077 = vpow2.f32 %v760_v48  ;;  %v745_v53 = vsub.f32 %v1291_v2, %v721_v51 }
 0x269   : > { %v770_v54 = vmul.f32 1.442695, %v744_v50  ;;  %v791_v55 = vsel %vm685_vm3, %v1336_v52, 0.0  ;;  %v1343_v57 = vpop.eup %1069 }
 0x26a   : > { %v772_v58 = vmul.f32 1.442695, %v745_v53  ;;  %792 = vadd.xlane.f32.xlu1 %v791_v55  ;;  %783 = vadd.xlane.f32.xlu0 %v782_v56  ;;  %v712_v59 = vpop.xlane.xlu0 %711  ;;  %v785_v1 = vsel %vm685_vm3, %v1343_v57, 0.0 }
 0x26b   : > { %1079 = vpow2.f32 %v770_v54  ;;  %v742_v60 = vsub.f32 %v1295_v5, %v712_v59  ;;  %v715_v61 = vpop.xlane.xlu1 %714 }
 0x26c   : > { %1081 = vpow2.f32 %v772_v58  ;;  %v743_v62 = vsub.f32 %v1297_v6, %v715_v61 }
 0x26d   : > { %v1347_v63 = vpop.eup %1071  ;;  %v766_v0 = vmul.f32 1.442695, %v742_v60 }
 0x26e   : > { %v1351_v2 = vpop.eup %1073  ;;  %v768_v3 = vmul.f32 1.442695, %v743_v62  ;;  %786 = vadd.xlane.f32.xlu1 %v785_v1  ;;  %v724_v4 = vpop.xlane.xlu0 %723  ;;  %v800_v7 = vsel %vm685_vm3, %v1347_v63, 0.0 }
 0x26f   : > { %1083 = vpow2.f32 %v766_v0  ;;  %v746_v5 = vsub.f32 %v1305_v13, %v724_v4  ;;  %801 = vadd.xlane.f32.xlu0 %v800_v7  ;;  %v803_v11 = vsel %vm685_vm3, %v1351_v2, 0.0 }
 0x270   : > { %1085 = vpow2.f32 %v768_v3  ;;  %v727_v6 = vpop.xlane.xlu1 %726 }
 0x271   : > { %v1356_v8 = vpop.eup %1075  ;;  %v774_v9 = vmul.f32 1.442695, %v746_v5  ;;  %v747_v10 = vsub.f32 %v1309_v17, %v727_v6 }
 0x272   : > { %v1361_v14 = vpop.eup %1077  ;;  %804 = vadd.xlane.f32.xlu1 %v803_v11  ;;  %v730_v15 = vpop.xlane.xlu0 %729  ;;  %v794_v18 = vsel %vm685_vm3, %v1356_v8, 0.0 }
 0x273   : > { %1087 = vpow2.f32 %v774_v9  ;;  %v776_v13 = vmul.f32 1.442695, %v747_v10  ;;  %v748_v20 = vsub.f32 %v1307_v16, %v730_v15  ;;  %795 = vadd.xlane.f32.xlu0 %v794_v18  ;;  %v797_v24 = vsel %vm685_vm3, %v1361_v14, 0.0 }
 0x274   : > { %v733_v21 = vpop.xlane.xlu1 %732 }
 0x275   : > { %v1366_v22 = vpop.eup %1079  ;;  %1089 = vpow2.f32 %v776_v13  ;;  %v778_v17 = vmul.f32 1.442695, %v748_v20  ;;  %v749_v23 = vsub.f32 %v1313_v19, %v733_v21 }
 0x276   : > { %v1371_v25 = vpop.eup %1081  ;;  %798 = vadd.xlane.f32.xlu1 %v797_v24  ;;  %v812_v26 = vsel %vm685_vm3, %v1366_v22, 0.0 }
 0x277   : > { %1091 = vpow2.f32 %v778_v17  ;;  %v780_v27 = vmul.f32 1.442695, %v749_v23  ;;  %813 = vadd.xlane.f32.xlu0 %v812_v26  ;;  %v815_v28 = vsel %vm685_vm3, %v1371_v25, 0.0 }
 0x279   : > { %v1375_v16 = vpop.eup %1083  ;;  %1093 = vpow2.f32 %v780_v27 }
 0x27a   : > { %v1379_v29 = vpop.eup %1085  ;;  %816 = vadd.xlane.f32.xlu1 %v815_v28  ;;  %v806_v19 = vsel %vm685_vm3, %v1375_v16, 0.0 }
 0x27b   : > { %807 = vadd.xlane.f32.xlu0 %v806_v19  ;;  %v809_v31 = vsel %vm685_vm3, %v1379_v29, 0.0 }
 0x27d   : > { %v1383_v30 = vpop.eup %1087 }
 0x27e   : > { %810 = vadd.xlane.f32.xlu1 %v809_v31  ;;  %v818_v32 = vsel %vm685_vm3, %v1383_v30, 0.0 }
 0x27f   : > { %v1389_v33 = vpop.eup %1089  ;;  %819 = vadd.xlane.f32.xlu0 %v818_v32 }
 0x280   : > { %v821_v34 = vsel %vm685_vm3, %v1389_v33, 0.0 }
 0x281   : > { %v1393_v35 = vpop.eup %1091 }
 0x282   : > { %822 = vadd.xlane.f32.xlu1 %v821_v34  ;;  %v824_v36 = vsel %vm685_vm3, %v1393_v35, 0.0 }
 0x283   : > { %v1397_v37 = vpop.eup %1093  ;;  %825 = vadd.xlane.f32.xlu0 %v824_v36 }
 0x284   : > { %v827_v12 = vsel %vm685_vm3, %v1397_v37, 0.0 }
 0x286   : > { %828 = vadd.xlane.f32.xlu1 %v827_v12 }
 0x2f3   : > { %v790_v38 = vpop.xlane.xlu0 %789 }
 0x2f4   : > { %1095 = vrcp.f32 %v790_v38 }
 0x2f7   : > { %v793_v39 = vpop.xlane.xlu1 %792  ;;  %v784_v40 = vpop.xlane.xlu0 %783 }
 0x2f8   : > { %1097 = vrcp.f32 %v793_v39 }
 0x2f9   : > { %1099 = vrcp.f32 %v784_v40 }
 0x2fb   : > { %v787_v41 = vpop.xlane.xlu1 %786 }
 0x2fc   : > { %1101 = vrcp.f32 %v787_v41  ;;  %v802_v42 = vpop.xlane.xlu0 %801 }
 0x2fd   : > { %1103 = vrcp.f32 %v802_v42 }
 0x2fe   : > { %v1096_v44 = vpop.eup %1095 }
 0x2ff   : > { %v835_v45 = vmul.f32 %v1096_v44, %v1328_v43  ;;  %v805_v46 = vpop.xlane.xlu1 %804 }
 0x300   : > { %1105 = vrcp.f32 %v805_v46  ;;  %v796_v48 = vpop.xlane.xlu0 %795 }
 0x301   : > { %864 = vst.msk [vmem:[%s1406_s20 + $0x10] sm:$0xff] %vm685_vm3, %v835_v45  ;;  %1107 = vrcp.f32 %v796_v48 }
 0x302   : > { %v1098_v49 = vpop.eup %1097 }
 0x303   : > { %v1100_v50 = vpop.eup %1099  ;;  %v837_v51 = vmul.f32 %v1098_v49, %v1336_v52  ;;  %v799_v53 = vpop.xlane.xlu1 %798 }
 0x304   : > { %v831_v54 = vmul.f32 %v1100_v50, %v1333_v47  ;;  %1109 = vrcp.f32 %v799_v53  ;;  %v814_v55 = vpop.xlane.xlu0 %813 }
 0x305   : > { %865 = vst.msk [vmem:[%s1406_s20 + $0x18] sm:$0xff] %vm685_vm3, %v837_v51  ;;  %1111 = vrcp.f32 %v814_v55 }
 0x306   : > { %v1102_v43 = vpop.eup %1101  ;;  %862 = vst.msk [vmem:[%s1406_s20] sm:$0xff] %vm685_vm3, %v831_v54 }
 0x307   : > { %v1104_v56 = vpop.eup %1103  ;;  %v833_v58 = vmul.f32 %v1102_v43, %v1343_v57  ;;  %v817_v59 = vpop.xlane.xlu1 %816 }
 0x308   : > { %v843_v60 = vmul.f32 %v1104_v56, %v1347_v63  ;;  %1113 = vrcp.f32 %v817_v59  ;;  %v808_v52 = vpop.xlane.xlu0 %807 }
 0x309   : > { %863 = vst.msk [vmem:[%s1406_s20 + $0x8] sm:$0xff] %vm685_vm3, %v833_v58  ;;  %1115 = vrcp.f32 %v808_v52 }
 0x30a   : > { %v1106_v47 = vpop.eup %1105  ;;  %868 = vst.msk [vmem:[%s1406_s20 + $0x30] sm:$0xff] %vm685_vm3, %v843_v60 }
 0x30b   : > { %v1108_v61 = vpop.eup %1107  ;;  %v845_v62 = vmul.f32 %v1106_v47, %v1351_v2  ;;  %v811_v0 = vpop.xlane.xlu1 %810 }
 0x30c   : > { %v839_v1 = vmul.f32 %v1108_v61, %v1356_v8  ;;  %1117 = vrcp.f32 %v811_v0  ;;  %v820_v57 = vpop.xlane.xlu0 %819 }
 0x30d   : > { %869 = vst.msk [vmem:[%s1406_s20 + $0x38] sm:$0xff] %vm685_vm3, %v845_v62  ;;  %1119 = vrcp.f32 %v820_v57 }
 0x30e   : > { %v1110_v63 = vpop.eup %1109  ;;  %866 = vst.msk [vmem:[%s1406_s20 + $0x20] sm:$0xff] %vm685_vm3, %v839_v1 }
 0x30f   : > { %v1112_v3 = vpop.eup %1111  ;;  %v841_v4 = vmul.f32 %v1110_v63, %v1361_v14  ;;  %v823_v7 = vpop.xlane.xlu1 %822 }
 0x310   : > { %v851_v2 = vmul.f32 %v1112_v3, %v1366_v22  ;;  %1121 = vrcp.f32 %v823_v7  ;;  %v826_v5 = vpop.xlane.xlu0 %825 }
 0x311   : > { %867 = vst.msk [vmem:[%s1406_s20 + $0x28] sm:$0xff] %vm685_vm3, %v841_v4  ;;  %1123 = vrcp.f32 %v826_v5 }
 0x312   : > { %v1114_v6 = vpop.eup %1113  ;;  %872 = vst.msk [vmem:[%s1406_s20 + $0x50] sm:$0xff] %vm685_vm3, %v851_v2 }
 0x313   : > { %v1116_v8 = vpop.eup %1115  ;;  %v853_v9 = vmul.f32 %v1114_v6, %v1371_v25  ;;  %v829_v10 = vpop.xlane.xlu1 %828 }
 0x314   : > { %v847_v11 = vmul.f32 %v1116_v8, %v1375_v16  ;;  %1125 = vrcp.f32 %v829_v10 }
 0x315   : > { %873 = vst.msk [vmem:[%s1406_s20 + $0x58] sm:$0xff] %vm685_vm3, %v853_v9 }
 0x316   : > { %v1118_v14 = vpop.eup %1117  ;;  %870 = vst.msk [vmem:[%s1406_s20 + $0x40] sm:$0xff] %vm685_vm3, %v847_v11 }
 0x317   : > { %v1120_v15 = vpop.eup %1119  ;;  %v849_v18 = vmul.f32 %v1118_v14, %v1379_v29 }
 0x318   : > { %v855_v13 = vmul.f32 %v1120_v15, %v1383_v30 }
 0x319   : > { %871 = vst.msk [vmem:[%s1406_s20 + $0x48] sm:$0xff] %vm685_vm3, %v849_v18 }
 0x31a   : > { %v1122_v20 = vpop.eup %1121  ;;  %874 = vst.msk [vmem:[%s1406_s20 + $0x60] sm:$0xff] %vm685_vm3, %v855_v13 }
 0x31b   : > { %v1124_v21 = vpop.eup %1123  ;;  %v857_v22 = vmul.f32 %v1122_v20, %v1389_v33 }
 0x31c   : > { %v859_v17 = vmul.f32 %v1124_v21, %v1393_v35 }
 0x31d   : > { %875 = vst.msk [vmem:[%s1406_s20 + $0x68] sm:$0xff] %vm685_vm3, %v857_v22 }
 0x31e   : > { %v1126_v23 = vpop.eup %1125  ;;  %876 = vst.msk [vmem:[%s1406_s20 + $0x70] sm:$0xff] %vm685_vm3, %v859_v17 }
 0x31f   : > { %v861_v24 = vmul.f32 %v1126_v23, %v1397_v37 }
 0x321   : > { %877 = vst.msk [vmem:[%s1406_s20 + $0x78] sm:$0xff] %vm685_vm3, %v861_v24 }
 0x322 PF: > { %s16_s21 = sadd.s32 1, %s1133_s21  }
 0x323   : > { %p13_p4 = scmp.ge.s32.totalorder %s16_s21, 4  }
 0x325   :  { %15 = sbr.rel (!%p13_p4) target bundleno = 1 (0x1), region = 77 }

</bundles_post_ra>
